<compile_context>
chip_gen: v7x
topology: tpu7x:2x2x1
jax: 0.10.0
libtpu: 0.0.40
codegen_flags: <defaults>
</compile_context>

<pallas_src>
import functools

import jax
import jax.numpy as jnp
from jax.experimental import pallas as pl


def topo_rnn_kernel(x_ref, win_ref, wrec_ref, b_ref, wout_ref,
                    out_ref, hid_ref, *, alpha, T, B):
    """Single-invocation kernel: whole sequence, no grid.

    x_ref:    (T*B, n_input)   flattened time-major input (B padded to 8k)
    win_ref:  (n_input, H)     W_in^T
    wrec_ref: (H, H)           W_rec^T
    b_ref:    (1, H)           bias
    wout_ref: (H, n_output)    W_out^T
    out_ref:  (T*B, n_output)  per-step readout (flattened)
    hid_ref:  (B, H)           final hidden state
    """
    alpha_f = jnp.float32(alpha)
    one_minus_alpha = jnp.float32(1.0 - alpha)

    # ---- Phase 1 (off the serial path): batched input projection ----------
    # alpha folded into the projection so the recurrence carries no scaling.
    xw = alpha_f * (jnp.dot(x_ref[...], win_ref[...],
                            preferred_element_type=jnp.float32)
                    + b_ref[...])                           # (T*B, H)

    # ---- Hoist loop invariants; fold alpha into the recurrent weight ------
    wrec_a = alpha_f * wrec_ref[...]                        # (H, H)

    # Per-step input slices depend only on xw (not on h): free filler under
    # the MXU latency of the serial chain.
    xw_t = [xw[t * B:(t + 1) * B, :] for t in range(T)]

    # ---- Phase 2: serial recurrence, fully unrolled at trace time ---------
    # h0 == 0, so step 0 reduces to relu(alpha * pre0) (skip the dead matmul).
    # Per step: h = (1-a)*h + relu(a*(x@Win + b) + h @ (a*Wrec))
    #             = (1-a)*h + a*relu(x@Win + b + h@Wrec)      (a > 0)
    h = jnp.maximum(xw_t[0], 0.0)                           # (B, H)
    hs = [h]
    for t in range(1, T):
        pre = xw_t[t] + jnp.dot(h, wrec_a,
                                preferred_element_type=jnp.float32)
        h = one_minus_alpha * h + jnp.maximum(pre, 0.0)
        hs.append(h)

    # ---- Phase 3 (off the serial path): readout from in-register history --
    # B is a sublane multiple, so this concatenate is a vreg-aligned stack
    # (no VMEM scratch round trip, no masked partial stores).
    h_all = jnp.concatenate(hs, axis=0)                     # (T*B, H)
    out_ref[...] = jnp.dot(h_all, wout_ref[...],
                           preferred_element_type=jnp.float32
                           ).astype(out_ref.dtype)
    hid_ref[...] = h.astype(hid_ref.dtype)


def topo_model_forward(x, w_in_t, w_rec_t, b, w_out_t, *, alpha):
    """x: (T, B, n_input). Returns (output (T, B, n_output), hidden (1, B, H))."""
    T, B, n_input = x.shape
    H = w_rec_t.shape[0]
    n_output = w_out_t.shape[1]

    # Pad batch up to a sublane multiple (8) so every per-step hidden tile is
    # a full vreg row; the zero padding rows are independent and sliced off
    # below. At real batch sizes (multiples of 8) this is a no-op.
    Bp = max(8, ((B + 7) // 8) * 8)
    if Bp != B:
        x = jnp.pad(x, ((0, 0), (0, Bp - B), (0, 0)))

    # Flatten time*batch in the wrapper (free); all in-kernel shapes are 2-D.
    x_flat = x.reshape(T * Bp, n_input)

    kernel = functools.partial(topo_rnn_kernel, alpha=float(alpha), T=T, B=Bp)

    flops = (2 * T * Bp * n_input * H            # input projection
             + 2 * (T - 1) * Bp * H * H          # serial recurrence
             + 2 * T * Bp * H * n_output)        # readout
    bytes_accessed = 4 * (T * Bp * n_input + n_input * H + H * H + H
                          + H * n_output + T * Bp * n_output + Bp * H)

    # No grid -> single invocation; every operand is a whole-array VMEM
    # resident (no double-buffering, no per-step DMA).
    out_flat, h_last = pl.pallas_call(
        kernel,
        out_shape=(
            jax.ShapeDtypeStruct((T * Bp, n_output), jnp.float32),
            jax.ShapeDtypeStruct((Bp, H), jnp.float32),
        ),
        cost_estimate=pl.CostEstimate(flops=flops, transcendentals=0,
                                      bytes_accessed=bytes_accessed),
    )(x_flat, w_in_t, w_rec_t, b, w_out_t)

    output = out_flat.reshape(T, Bp, n_output)[:, :B, :]
    hidden = h_last[:B][None]
    return output, hidden


def topo_model_reference(x, w_in_t, w_rec_t, b, w_out_t, *, alpha):
    """Pure-JAX reference (lax.scan) mirroring the PyTorch forward."""
    T, B, _ = x.shape
    H = w_rec_t.shape[0]

    def step(h, x_t):
        pre = x_t @ w_in_t + h @ w_rec_t + b
        h_new = (1.0 - alpha) * h + alpha * jnp.maximum(pre, 0.0)
        return h_new, h_new @ w_out_t

    h0 = jnp.zeros((B, H), jnp.float32)
    h_last, outs = jax.lax.scan(step, h0, x)
    return outs, h_last[None]


if __name__ == "__main__":
    # hp: n_input=4, n_rnn=32, n_output=3, decay=0.8 (alpha = 1 - decay = 0.2),
    #     rnn_type='ctrnn', num_layers=1, activation='relu', use_norm=False
    T, B, n_input, n_rnn, n_output = 8, 2, 4, 32, 3
    alpha = 0.2

    key = jax.random.PRNGKey(0)
    kx, k1, k2, k3, k4 = jax.random.split(key, 5)

    x = jax.random.normal(kx, (T, B, n_input), jnp.float32)
    # Deterministic synthetic parameters (stored pre-transposed for x @ W^T).
    w_in_t = jax.random.normal(k1, (n_input, n_rnn), jnp.float32) * 0.3
    w_rec_t = jax.random.normal(k2, (n_rnn, n_rnn), jnp.float32) * (1.0 / n_rnn**0.5)
    b = jax.random.normal(k3, (1, n_rnn), jnp.float32) * 0.1
    w_out_t = jax.random.normal(k4, (n_rnn, n_output), jnp.float32) * 0.3

    output, hidden = topo_model_forward(x, w_in_t, w_rec_t, b, w_out_t, alpha=alpha)
    output = jax.block_until_ready(output)
    hidden = jax.block_until_ready(hidden)

    ref_out, ref_hid = topo_model_reference(x, w_in_t, w_rec_t, b, w_out_t, alpha=alpha)
    assert output.shape == (T, B, n_output) and hidden.shape == (1, B, n_rnn)
    assert jnp.allclose(output, ref_out, atol=1e-4, rtol=1e-4)
    assert jnp.allclose(hidden, ref_hid, atol=1e-4, rtol=1e-4)

    print("KERNEL_OK")
</pallas_src>

<mosaic_0001>
module attributes {stable_mosaic.version = 11 : i64} {
  func.func @topo_rnn_kernel(%arg0: memref<64x4xf32, #tpu.memory_space<vmem>>, %arg1: memref<4x32xf32, #tpu.memory_space<vmem>>, %arg2: memref<32x32xf32, #tpu.memory_space<vmem>>, %arg3: memref<1x32xf32, #tpu.memory_space<vmem>>, %arg4: memref<32x3xf32, #tpu.memory_space<vmem>>, %arg5: memref<64x3xf32, #tpu.memory_space<vmem>>, %arg6: memref<8x32xf32, #tpu.memory_space<vmem>>) attributes {dimension_semantics = [], scalar_prefetch = 0 : i64, scratch_operands = 0 : i64, tpu.core_type = #tpu.core_type<tc>} {
    %c0 = arith.constant 0 : index
    %c0_0 = arith.constant 0 : index
    %0 = vector.load %arg0[%c0, %c0_0] : memref<64x4xf32, #tpu.memory_space<vmem>>, vector<64x4xf32>
    %c0_1 = arith.constant 0 : index
    %c0_2 = arith.constant 0 : index
    %1 = vector.load %arg1[%c0_1, %c0_2] : memref<4x32xf32, #tpu.memory_space<vmem>>, vector<4x32xf32>
    %cst = arith.constant dense<0.000000e+00> : vector<64x32xf32>
    %2 = tpu.matmul %0, %1, %cst {dimension_numbers = #tpu.dot_dimension_numbers<[1], [0], [0], [1], [0, 0, 1, 1], [], []>} : vector<64x4xf32>, vector<4x32xf32>, vector<64x32xf32> -> vector<64x32xf32>
    %c0_3 = arith.constant 0 : index
    %c0_4 = arith.constant 0 : index
    %3 = vector.load %arg3[%c0_3, %c0_4] : memref<1x32xf32, #tpu.memory_space<vmem>>, vector<1x32xf32>
    %4 = vector.broadcast %3 : vector<1x32xf32> to vector<64x32xf32>
    %5 = arith.addf %2, %4 : vector<64x32xf32>
    %cst_5 = arith.constant 2.000000e-01 : f32
    %6 = vector.broadcast %cst_5 : f32 to vector<64x32xf32>
    %7 = arith.mulf %6, %5 : vector<64x32xf32>
    %c0_6 = arith.constant 0 : index
    %c0_7 = arith.constant 0 : index
    %8 = vector.load %arg2[%c0_6, %c0_7] : memref<32x32xf32, #tpu.memory_space<vmem>>, vector<32x32xf32>
    %cst_8 = arith.constant 2.000000e-01 : f32
    %9 = vector.broadcast %cst_8 : f32 to vector<32x32xf32>
    %10 = arith.mulf %9, %8 : vector<32x32xf32>
    %11 = vector.extract_strided_slice %7 {offsets = [0, 0], sizes = [8, 32], strides = [1, 1]} : vector<64x32xf32> to vector<8x32xf32>
    %12 = vector.extract_strided_slice %7 {offsets = [8, 0], sizes = [8, 32], strides = [1, 1]} : vector<64x32xf32> to vector<8x32xf32>
    %13 = vector.extract_strided_slice %7 {offsets = [16, 0], sizes = [8, 32], strides = [1, 1]} : vector<64x32xf32> to vector<8x32xf32>
    %14 = vector.extract_strided_slice %7 {offsets = [24, 0], sizes = [8, 32], strides = [1, 1]} : vector<64x32xf32> to vector<8x32xf32>
    %15 = vector.extract_strided_slice %7 {offsets = [32, 0], sizes = [8, 32], strides = [1, 1]} : vector<64x32xf32> to vector<8x32xf32>
    %16 = vector.extract_strided_slice %7 {offsets = [40, 0], sizes = [8, 32], strides = [1, 1]} : vector<64x32xf32> to vector<8x32xf32>
    %17 = vector.extract_strided_slice %7 {offsets = [48, 0], sizes = [8, 32], strides = [1, 1]} : vector<64x32xf32> to vector<8x32xf32>
    %18 = vector.extract_strided_slice %7 {offsets = [56, 0], sizes = [8, 32], strides = [1, 1]} : vector<64x32xf32> to vector<8x32xf32>
    %cst_9 = arith.constant 0.000000e+00 : f32
    %19 = vector.broadcast %cst_9 : f32 to vector<8x32xf32>
    %20 = arith.maximumf %11, %19 : vector<8x32xf32>
    %cst_10 = arith.constant dense<0.000000e+00> : vector<8x32xf32>
    %21 = tpu.matmul %20, %10, %cst_10 {dimension_numbers = #tpu.dot_dimension_numbers<[1], [0], [0], [1], [0, 0, 1, 1], [], []>} : vector<8x32xf32>, vector<32x32xf32>, vector<8x32xf32> -> vector<8x32xf32>
    %22 = arith.addf %12, %21 : vector<8x32xf32>
    %cst_11 = arith.constant 8.000000e-01 : f32
    %23 = vector.broadcast %cst_11 : f32 to vector<8x32xf32>
    %24 = arith.mulf %23, %20 : vector<8x32xf32>
    %cst_12 = arith.constant 0.000000e+00 : f32
    %25 = vector.broadcast %cst_12 : f32 to vector<8x32xf32>
    %26 = arith.maximumf %22, %25 : vector<8x32xf32>
    %27 = arith.addf %24, %26 : vector<8x32xf32>
    %cst_13 = arith.constant dense<0.000000e+00> : vector<8x32xf32>
    %28 = tpu.matmul %27, %10, %cst_13 {dimension_numbers = #tpu.dot_dimension_numbers<[1], [0], [0], [1], [0, 0, 1, 1], [], []>} : vector<8x32xf32>, vector<32x32xf32>, vector<8x32xf32> -> vector<8x32xf32>
    %29 = arith.addf %13, %28 : vector<8x32xf32>
    %cst_14 = arith.constant 8.000000e-01 : f32
    %30 = vector.broadcast %cst_14 : f32 to vector<8x32xf32>
    %31 = arith.mulf %30, %27 : vector<8x32xf32>
    %cst_15 = arith.constant 0.000000e+00 : f32
    %32 = vector.broadcast %cst_15 : f32 to vector<8x32xf32>
    %33 = arith.maximumf %29, %32 : vector<8x32xf32>
    %34 = arith.addf %31, %33 : vector<8x32xf32>
    %cst_16 = arith.constant dense<0.000000e+00> : vector<8x32xf32>
    %35 = tpu.matmul %34, %10, %cst_16 {dimension_numbers = #tpu.dot_dimension_numbers<[1], [0], [0], [1], [0, 0, 1, 1], [], []>} : vector<8x32xf32>, vector<32x32xf32>, vector<8x32xf32> -> vector<8x32xf32>
    %36 = arith.addf %14, %35 : vector<8x32xf32>
    %cst_17 = arith.constant 8.000000e-01 : f32
    %37 = vector.broadcast %cst_17 : f32 to vector<8x32xf32>
    %38 = arith.mulf %37, %34 : vector<8x32xf32>
    %cst_18 = arith.constant 0.000000e+00 : f32
    %39 = vector.broadcast %cst_18 : f32 to vector<8x32xf32>
    %40 = arith.maximumf %36, %39 : vector<8x32xf32>
    %41 = arith.addf %38, %40 : vector<8x32xf32>
    %cst_19 = arith.constant dense<0.000000e+00> : vector<8x32xf32>
    %42 = tpu.matmul %41, %10, %cst_19 {dimension_numbers = #tpu.dot_dimension_numbers<[1], [0], [0], [1], [0, 0, 1, 1], [], []>} : vector<8x32xf32>, vector<32x32xf32>, vector<8x32xf32> -> vector<8x32xf32>
    %43 = arith.addf %15, %42 : vector<8x32xf32>
    %cst_20 = arith.constant 8.000000e-01 : f32
    %44 = vector.broadcast %cst_20 : f32 to vector<8x32xf32>
    %45 = arith.mulf %44, %41 : vector<8x32xf32>
    %cst_21 = arith.constant 0.000000e+00 : f32
    %46 = vector.broadcast %cst_21 : f32 to vector<8x32xf32>
    %47 = arith.maximumf %43, %46 : vector<8x32xf32>
    %48 = arith.addf %45, %47 : vector<8x32xf32>
    %cst_22 = arith.constant dense<0.000000e+00> : vector<8x32xf32>
    %49 = tpu.matmul %48, %10, %cst_22 {dimension_numbers = #tpu.dot_dimension_numbers<[1], [0], [0], [1], [0, 0, 1, 1], [], []>} : vector<8x32xf32>, vector<32x32xf32>, vector<8x32xf32> -> vector<8x32xf32>
    %50 = arith.addf %16, %49 : vector<8x32xf32>
    %cst_23 = arith.constant 8.000000e-01 : f32
    %51 = vector.broadcast %cst_23 : f32 to vector<8x32xf32>
    %52 = arith.mulf %51, %48 : vector<8x32xf32>
    %cst_24 = arith.constant 0.000000e+00 : f32
    %53 = vector.broadcast %cst_24 : f32 to vector<8x32xf32>
    %54 = arith.maximumf %50, %53 : vector<8x32xf32>
    %55 = arith.addf %52, %54 : vector<8x32xf32>
    %cst_25 = arith.constant dense<0.000000e+00> : vector<8x32xf32>
    %56 = tpu.matmul %55, %10, %cst_25 {dimension_numbers = #tpu.dot_dimension_numbers<[1], [0], [0], [1], [0, 0, 1, 1], [], []>} : vector<8x32xf32>, vector<32x32xf32>, vector<8x32xf32> -> vector<8x32xf32>
    %57 = arith.addf %17, %56 : vector<8x32xf32>
    %cst_26 = arith.constant 8.000000e-01 : f32
    %58 = vector.broadcast %cst_26 : f32 to vector<8x32xf32>
    %59 = arith.mulf %58, %55 : vector<8x32xf32>
    %cst_27 = arith.constant 0.000000e+00 : f32
    %60 = vector.broadcast %cst_27 : f32 to vector<8x32xf32>
    %61 = arith.maximumf %57, %60 : vector<8x32xf32>
    %62 = arith.addf %59, %61 : vector<8x32xf32>
    %cst_28 = arith.constant dense<0.000000e+00> : vector<8x32xf32>
    %63 = tpu.matmul %62, %10, %cst_28 {dimension_numbers = #tpu.dot_dimension_numbers<[1], [0], [0], [1], [0, 0, 1, 1], [], []>} : vector<8x32xf32>, vector<32x32xf32>, vector<8x32xf32> -> vector<8x32xf32>
    %64 = arith.addf %18, %63 : vector<8x32xf32>
    %cst_29 = arith.constant 8.000000e-01 : f32
    %65 = vector.broadcast %cst_29 : f32 to vector<8x32xf32>
    %66 = arith.mulf %65, %62 : vector<8x32xf32>
    %cst_30 = arith.constant 0.000000e+00 : f32
    %67 = vector.broadcast %cst_30 : f32 to vector<8x32xf32>
    %68 = arith.maximumf %64, %67 : vector<8x32xf32>
    %69 = arith.addf %66, %68 : vector<8x32xf32>
    %70 = tpu.concatenate %20, %27, %34, %41, %48, %55, %62, %69 in 0 : vector<8x32xf32>, vector<8x32xf32>, vector<8x32xf32>, vector<8x32xf32>, vector<8x32xf32>, vector<8x32xf32>, vector<8x32xf32>, vector<8x32xf32> -> vector<64x32xf32>
    %c0_31 = arith.constant 0 : index
    %c0_32 = arith.constant 0 : index
    %71 = vector.load %arg4[%c0_31, %c0_32] : memref<32x3xf32, #tpu.memory_space<vmem>>, vector<32x3xf32>
    %cst_33 = arith.constant dense<0.000000e+00> : vector<64x3xf32>
    %72 = tpu.matmul %70, %71, %cst_33 {dimension_numbers = #tpu.dot_dimension_numbers<[1], [0], [0], [1], [0, 0, 1, 1], [], []>} : vector<64x32xf32>, vector<32x3xf32>, vector<64x3xf32> -> vector<64x3xf32>
    %c0_34 = arith.constant 0 : index
    %c0_35 = arith.constant 0 : index
    %73 = vector.load %arg5[%c0_34, %c0_35] : memref<64x3xf32, #tpu.memory_space<vmem>>, vector<64x3xf32>
    tpu.vector_store %arg5[%c0_34, %c0_35], %72 {strides = array<i32>} : memref<64x3xf32, #tpu.memory_space<vmem>>, vector<64x3xf32>,
    %c0_36 = arith.constant 0 : index
    %c0_37 = arith.constant 0 : index
    %74 = vector.load %arg6[%c0_36, %c0_37] : memref<8x32xf32, #tpu.memory_space<vmem>>, vector<8x32xf32>
    tpu.vector_store %arg6[%c0_36, %c0_37], %69 {strides = array<i32>} : memref<8x32xf32, #tpu.memory_space<vmem>>, vector<8x32xf32>,
    return
  }
}

</mosaic_0001>

<bundles_post_ra>
// kernel: tpu_custom_call.1
= control target key start
LH: loop header
LB: loop body
LE: loop exit
PB: predicated region body
PF: predicated region fallthrough
CT: control target
= control target key end

     0   :  { %vm64_vm0 = vcmask 1043456   ;;  %vm39_vm1 = vcmask 31744   ;;  %v1140_v8 = vmov 0.0|0.0   ;;  %s1376_s0 = inlined_call_operand.vmem [shape: f32[64,4], index: 0, kind: input, shape index: {}]   ;;  %s1377_s1 = inlined_call_operand.vmem [shape: f32[4,32], index: 1, kind: input, shape index: {}]   ;;  %s1378_s2 = inlined_call_operand.vmem [shape: f32[32,32], index: 2, kind: input, shape index: {}]   ;;  %s1379_s3 = inlined_call_operand.vmem [shape: f32[1,32], index: 3, kind: input, shape index: {}]   ;;  %s1380_s4 = inlined_call_operand.vmem [shape: f32[32,3], index: 4, kind: input, shape index: {}]   ;;  %s1381_s5 = inlined_call_operand.vmem [shape: f32[64,3], index: 5, kind: output, shape index: {0}]   ;;  %s1382_s6 = inlined_call_operand.hbm [shape: f32[8,32], index: 6, kind: output, shape index: {1}]  }
   0x1   :  { %v31_v0 = vld [vmem:[%s1377_s1] sm:$0xf]  ;;  %v24_v2 = vld [vmem:[%s1376_s0 + $0x8] sm:$0xff]  ;;  %v25_v5 = vld [vmem:[%s1376_s0 + $0x10] sm:$0xff]  ;;  %1068 = vmatprep.subr.bf16.mxu1 %v1140_v8 }
   0x2   :  { %v23_v1 = vld [vmem:[%s1376_s0] sm:$0xff]  ;;  %951 = vmatprep.subr.msk.mxu0 %vm64_vm0, %v31_v0  ;;  %v182_v4 = vld [vmem:[%s1378_s2 + $0x8] sm:$0xff] }
   0x3   :  { %953 = vmatprep.mubr.msk.f32.mxu0 %vm39_vm1, %v23_v1  ;;  %v181_v3 = vld [vmem:[%s1378_s2] sm:$0xff]  ;;  %952 = vmatpush3.msk.msra.mxu0 %vm64_vm0, %v31_v0  ;;  %v186_v7 = vmul.f32 0.2, %v182_v4 }
   0x4   :  { %v185_v6 = vmul.f32 0.2, %v181_v3  ;;  %954 = vmatmul.mubr.msk.f32.vlgmr.msra.gmra.mrb[0].mxu0 %vm39_vm1, %v24_v2  ;;  %1062 = vmatprep.subr.bf16.mxu0 %v1140_v8 }
   0x5   :  { %12 = vsyncpa [#allocation3], 0  ;;  %956 = vmatprep.mubr.msk.f32.mxu0 %vm39_vm1, %v25_v5  ;;  %v26_v10 = vld [vmem:[%s1376_s0 + $0x18] sm:$0xff]  ;;  %v27_v11 = vld [vmem:[%s1376_s0 + $0x20] sm:$0xff]  ;;  %vm1141_vm2 = vmmov 0   ;;  %v1142_v20 = vmov 0.0  }
   0x6   :  { %v1201_v9 = vpack.c.bf16 %v186_v7, %v185_v6  ;;  %v28_v12 = vld [vmem:[%s1376_s0 + $0x28] sm:$0xff]  ;;  %v183_v13 = vld [vmem:[%s1378_s2 + $0x10] sm:$0xff]  ;;  %v184_v14 = vld [vmem:[%s1378_s2 + $0x18] sm:$0xff]  ;;  %984 = vmatprep.mubr.msk.f32.mxu1 %vm1141_vm2, %v1142_v20  ;;  %vm190_vm3 = vcmask 261120   ;;  %vm842_vm4 = vcmask 23552   ;;  %s1143_s15 = smov [#allocation2]  }
   0x7   :  { %v187_v15 = vmul.f32 0.2, %v183_v13  ;;  %v188_v16 = vmul.f32 0.2, %v184_v14  ;;  %v29_v17 = vld [vmem:[%s1376_s0 + $0x30] sm:$0xff]  ;;  %v30_v18 = vld [vmem:[%s1376_s0 + $0x38] sm:$0xff] }
   0x8   :  { %1064 = vmatpush3.bf16.msra.mxu0 %v1201_v9  ;;  %1070 = vmatpush3.bf16.msra.mxu1 %v1201_v9  ;;  %v1247_v21 = vld [vmem:[%s1379_s3] ss:$0 sm:$0xff]  ;;  %v731_v2 = vld [vmem:[%s1380_s4 + $0x8] sm:$0xff]  ;;  %s860_s16 = sshll.u32 %s1143_s15, 4  ;;  %s861_s16 = int_to_ptr.vmem [resolvable:$true] %s860_s16 }
   0x9   :  { %957 = vmatmul.mubr.msk.f32.gmra.mrb[2].mxu0 %vm39_vm1, %v26_v10  ;;  %1065 = vmatprep.subr.bf16.mxu0 %v1140_v8  ;;  %v1233_v19 = vpack.c.bf16 %v188_v16, %v187_v15  ;;  %v730_v1 = vld [vmem:[%s1380_s4] sm:$0xff]  ;;  %v733_v10 = vld [vmem:[%s1380_s4 + $0x18] sm:$0xff]  ;;  %s1116_s17 = scalar_lea.vmem %s861_s16, 128  ;;  %p1121_p1 = scmp.lt.s32.totalorder %s861_s16, %s861_s16 }
   0xa   :  { %959 = vmatprep.mubr.msk.f32.mxu0 %vm39_vm1, %v27_v11  ;;  %1071 = vmatprep.subr.bf16.mxu1 %v1140_v8  ;;  %v1104_v3 = vpack.c.bf16 %v731_v2, %v730_v1  ;;  %p1117_p0 = scmp.ne.s32.totalorder %s861_s16, %s1116_s17  ;;  %p1122_p2 = scmp.lt.s32.totalorder %s1116_s17, %s1116_s17 }
   0xc   :  { %1067 = vmatpush3.bf16.msra.mxu0 %v1233_v19  ;;  %1073 = vmatpush3.bf16.msra.mxu1 %v1233_v19  ;;  %p1123_p3 = por %p1122_p2, %p1121_p1 }
   0xd   :  { %960 = vmatmul.mubr.msk.f32.gmra.mrb[4].mxu0 %vm39_vm1, %v28_v12  ;;  %1074 = vmatprep.subr.bf16.mxu0 %v1140_v8 }
   0xe   :  { %962 = vmatprep.mubr.msk.f32.mxu0 %vm39_vm1, %v29_v17  ;;  %1080 = vmatprep.subr.bf16.mxu1 %v1140_v8  ;;  %p1124_p4 = pnand %p1123_p3, %p1117_p0 }
  0x11   :  { %963 = vmatmul.mubr.msk.f32.gmra.mrb[6].mxu0 %vm39_vm1, %v30_v18 }
  0x12   :  { %973 = vmatprep.mubr.msk.f32.mxu0 %vm1141_vm2, %v1142_v20 }
  0xd7   :  { %v955_v22 = vpop.f32.mrb[0].mxu0 }
  0xd8   :  { %v134_v23 = vpop.f32.mrb[1].mxu0  ;;  %v140_v33 = vadd.f32 %v955_v22, %v1247_v21 }
  0xd9   :  { %v135_v24 = vadd.f32 %v1247_v21, %v134_v23 }
  0xda   :  { %v174_v34 = vmul.f32 0.2, %v140_v33 }
  0xdb   :  { %v173_v25 = vmul.f32 0.2, %v135_v24 }
  0xdc   :  { %v958_v26 = vpop.f32.mrb[2].mxu0 }
  0xdd   :  { %v144_v27 = vpop.f32.mrb[3].mxu0  ;;  %v1250_v28 = vmax.f32 %v173_v25, 0.0  ;;  %v150_v49 = vadd.f32 %v958_v26, %v1247_v21 }
  0xde   :  { %v145_v41 = vadd.f32 %v1247_v21, %v144_v27 }
  0xdf   :  { %974 = vmatmul.mubr.msk.f32.vlgmr.msra.gmra.mrb[8].mxu0 %vm190_vm3, %v1250_v28  ;;  %v265_v38 = vmul.f32 0.8, %v1250_v28  ;;  %v176_v50 = vmul.f32 0.2, %v150_v49 }
  0xe0   :  { %v1254_v29 = vpop.f32.mrb[4].mxu0  ;;  %1076 = vmatpush3.bf16.msra.mxu0 %v1201_v9  ;;  %995 = vmatprep.mubr.msk.f32.mxu0 %vm1141_vm2, %v1142_v20  ;;  %v175_v42 = vmul.f32 0.2, %v145_v41 }
  0xe1   :  { %v154_v30 = vpop.f32.mrb[5].mxu0  ;;  %1077 = vmatprep.subr.bf16.mxu0 %v1140_v8  ;;  %v160_v4 = vadd.f32 %v1254_v29, %v1247_v21 }
  0xe2   :  { %v155_v57 = vadd.f32 %v1247_v21, %v154_v30 }
  0xe3   :  { %v178_v5 = vmul.f32 0.2, %v160_v4 }
  0xe4   :  { %1079 = vmatpush3.bf16.msra.mxu0 %v1233_v19  ;;  %v1262_v31 = vpop.f32.mrb[6].mxu0  ;;  %v177_v58 = vmul.f32 0.2, %v155_v57 }
  0xe5   :  { %1086 = vmatprep.subr.bf16.mxu0 %v1140_v8  ;;  %v1264_v32 = vpop.f32.mrb[7].mxu0  ;;  %v170_v30 = vadd.f32 %v1262_v31, %v1247_v21 }
  0xe6   :  { %v165_v15 = vadd.f32 %v1247_v21, %v1264_v32 }
  0xe7   :  { %v180_v32 = vmul.f32 0.2, %v170_v30 }
  0xe8   :  { %v179_v16 = vmul.f32 0.2, %v165_v15 }
 0x1b2   :  { %v260_v35 = vpop.f32.mrb[8].mxu0 }
 0x1b3   :  { %v264_v36 = vadd.f32 %v260_v35, %v174_v34  ;;  %v975_v37 = vpop.f32.mrb[9].mxu0 }
 0x1b5   :  { %v266_v39 = vmax.f32 %v264_v36, 0.0 }
 0x1b7   :  { %v1268_v40 = vadd.f32 %v266_v39, %v265_v38 }
 0x1b9   :  { %985 = vmatmul.mubr.msk.f32.vlgmr.msra.gmra.mrb[0].mxu1 %vm190_vm3, %v1268_v40  ;;  %v342_v46 = vmul.f32 0.8, %v1268_v40 }
 0x1ba   :  { %1082 = vmatpush3.bf16.msra.mxu1 %v1201_v9  ;;  %1006 = vmatprep.mubr.msk.f32.mxu1 %vm1141_vm2, %v1142_v20 }
 0x1bb   :  { %1083 = vmatprep.subr.bf16.mxu1 %v1140_v8 }
 0x1be   :  { %1085 = vmatpush3.bf16.msra.mxu1 %v1233_v19 }
 0x1bf   :  { %1092 = vmatprep.subr.bf16.mxu1 %v1140_v8 }
 0x28c   :  { %v337_v43 = vpop.f32.mrb[0].mxu1 }
 0x28d   :  { %v341_v44 = vadd.f32 %v337_v43, %v175_v42  ;;  %v986_v45 = vpop.f32.mrb[1].mxu1 }
 0x28f   :  { %v343_v47 = vmax.f32 %v341_v44, 0.0 }
 0x291   :  { %v344_v48 = vadd.f32 %v343_v47, %v342_v46 }
 0x293   :  { %996 = vmatmul.mubr.msk.f32.vlgmr.msra.gmra.mrb[10].mxu0 %vm190_vm3, %v344_v48  ;;  %v419_v54 = vmul.f32 0.8, %v344_v48 }
 0x294   :  { %1088 = vmatpush3.bf16.msra.mxu0 %v1201_v9  ;;  %1017 = vmatprep.mubr.msk.f32.mxu0 %vm1141_vm2, %v1142_v20 }
 0x295   :  { %1089 = vmatprep.subr.bf16.mxu0 %v1140_v8 }
 0x298   :  { %1091 = vmatpush3.bf16.msra.mxu0 %v1233_v19 }
 0x299   :  { %1098 = vmatprep.subr.bf16.mxu0 %v1140_v8 }
 0x366   :  { %v414_v51 = vpop.f32.mrb[10].mxu0 }
 0x367   :  { %v418_v52 = vadd.f32 %v414_v51, %v176_v50  ;;  %v997_v53 = vpop.f32.mrb[11].mxu0 }
 0x369   :  { %v420_v55 = vmax.f32 %v418_v52, 0.0 }
 0x36b   :  { %v421_v56 = vadd.f32 %v420_v55, %v419_v54 }
 0x36d   :  { %1007 = vmatmul.mubr.msk.f32.vlgmr.msra.gmra.mrb[2].mxu1 %vm190_vm3, %v421_v56  ;;  %v496_v62 = vmul.f32 0.8, %v421_v56 }
 0x36e   :  { %1094 = vmatpush3.bf16.msra.mxu1 %v1201_v9  ;;  %1028 = vmatprep.mubr.msk.f32.mxu1 %vm1141_vm2, %v1142_v20 }
 0x36f   :  { %1095 = vmatprep.subr.bf16.mxu1 %v1140_v8 }
 0x372   :  { %1097 = vmatpush3.bf16.msra.mxu1 %v1233_v19 }
 0x373   :  { %1105 = vmatprep.subr.bf16.mxu1 %v1104_v3 }
 0x440   :  { %v491_v59 = vpop.f32.mrb[2].mxu1 }
 0x441   :  { %v495_v60 = vadd.f32 %v491_v59, %v177_v58  ;;  %v1008_v61 = vpop.f32.mrb[3].mxu1 }
 0x443   :  { %v497_v63 = vmax.f32 %v495_v60, 0.0 }
 0x445   :  { %v498_v0 = vadd.f32 %v497_v63, %v496_v62 }
 0x447   :  { %1018 = vmatmul.mubr.msk.f32.vlgmr.msra.gmra.mrb[12].mxu0 %vm190_vm3, %v498_v0  ;;  %v573_v11 = vmul.f32 0.8, %v498_v0 }
 0x448   :  { %1100 = vmatpush3.bf16.msra.mxu0 %v1201_v9  ;;  %1039 = vmatprep.mubr.msk.f32.mxu0 %vm1141_vm2, %v1142_v20 }
 0x449   :  { %1101 = vmatprep.subr.bf16.mxu0 %v1140_v8  ;;  %v732_v8 = vld [vmem:[%s1380_s4 + $0x10] sm:$0xff] }
 0x44a   :  { %v1108_v14 = vpack.c.bf16 %v733_v10, %v732_v8 }
 0x44c   :  { %1103 = vmatpush3.bf16.msra.mxu0 %v1233_v19 }
 0x51a   :  { %v568_v6 = vpop.f32.mrb[12].mxu0 }
 0x51b   :  { %v572_v7 = vadd.f32 %v568_v6, %v178_v5  ;;  %v1019_v9 = vpop.f32.mrb[13].mxu0 }
 0x51d   :  { %v574_v12 = vmax.f32 %v572_v7, 0.0 }
 0x51f   :  { %v575_v13 = vadd.f32 %v574_v12, %v573_v11 }
 0x521   :  { %1029 = vmatmul.mubr.msk.f32.vlgmr.msra.gmra.mrb[4].mxu1 %vm190_vm3, %v575_v13  ;;  %v650_v20 = vmul.f32 0.8, %v575_v13 }
 0x522   :  { %1107 = vmatpush3.bf16.msra.mxu1 %v1104_v3  ;;  %1050 = vmatprep.mubr.msk.f32.mxu1 %vm190_vm3, %v1250_v28 }
 0x523   :  { %1109 = vmatprep.subr.bf16.mxu1 %v1108_v14 }
 0x526   :  { %1111 = vmatpush3.bf16.msra.mxu1 %v1108_v14 }
 0x529   :  { %1051 = vmatmul.mubr.msk.f32.vlgmr.msra.gmra.mrb[6].mxu1 %vm190_vm3, %v1268_v40 }
 0x52a   :  { %1053 = vmatprep.mubr.msk.f32.mxu1 %vm190_vm3, %v344_v48 }
 0x52d   :  { %1054 = vmatmul.mubr.msk.f32.gmra.mrb[8].mxu1 %vm190_vm3, %v421_v56 }
 0x52e   :  { %1056 = vmatprep.mubr.msk.f32.mxu1 %vm190_vm3, %v498_v0 }
 0x531   :  { %1057 = vmatmul.mubr.msk.f32.gmra.mrb[10].mxu1 %vm190_vm3, %v575_v13 }
 0x5f4   :  { %v645_v17 = vpop.f32.mrb[4].mxu1 }
 0x5f5   :  { %v649_v18 = vadd.f32 %v645_v17, %v179_v16  ;;  %v1030_v19 = vpop.f32.mrb[5].mxu1 }
 0x5f7   :  { %v651_v22 = vmax.f32 %v649_v18, 0.0 }
 0x5f9   :  { %v652_v23 = vadd.f32 %v651_v22, %v650_v20 }
 0x5fb   :  { %1040 = vmatmul.mubr.msk.f32.vlgmr.msra.gmra.mrb[14].mxu0 %vm190_vm3, %v652_v23  ;;  %1059 = vmatprep.mubr.msk.f32.mxu1 %vm190_vm3, %v652_v23  ;;  %v727_v36 = vmul.f32 0.8, %v652_v23 }
 0x5fc   :  { %v1052_v24 = vpop.f32.mrb[6].mxu1 }
 0x5fd   :  { %844 = vst.msk [vmem:[%s1381_s5 + $0x8] sm:$0xff] %vm842_vm4, %v1052_v24  ;;  %v803_v25 = vpop.f32.mrb[7].mxu1 }
 0x5fe   :  { %843 = vst.msk [vmem:[%s1381_s5] sm:$0xff] %vm842_vm4, %v803_v25 }
 0x600   :  { %v1055_v26 = vpop.f32.mrb[8].mxu1 }
 0x601   :  { %846 = vst.msk [vmem:[%s1381_s5 + $0x18] sm:$0xff] %vm842_vm4, %v1055_v26  ;;  %v813_v27 = vpop.f32.mrb[9].mxu1 }
 0x602   :  { %845 = vst.msk [vmem:[%s1381_s5 + $0x10] sm:$0xff] %vm842_vm4, %v813_v27 }
 0x604   :  { %v1058_v28 = vpop.f32.mrb[10].mxu1 }
 0x605   :  { %848 = vst.msk [vmem:[%s1381_s5 + $0x28] sm:$0xff] %vm842_vm4, %v1058_v28  ;;  %v823_v29 = vpop.f32.mrb[11].mxu1 }
 0x606   :  { %847 = vst.msk [vmem:[%s1381_s5 + $0x20] sm:$0xff] %vm842_vm4, %v823_v29 }
 0x6ce   :  { %v722_v33 = vpop.f32.mrb[14].mxu0 }
 0x6cf   :  { %v726_v34 = vadd.f32 %v722_v33, %v180_v32  ;;  %v1041_v35 = vpop.f32.mrb[15].mxu0 }
 0x6d1   :  { %v728_v37 = vmax.f32 %v726_v34, 0.0 }
 0x6d3   :  { %v729_v38 = vadd.f32 %v728_v37, %v727_v36 }
 0x6d5   :  { %851 = vst.msk [vmem:[#allocation2] sm:$0xff] %vm190_vm3, %v729_v38  ;;  %1060 = vmatmul.mubr.msk.f32.gmra.mrb[12].mxu1 %vm190_vm3, %v729_v38 }
 0x6d6   :  { %1127 = shalt.err (!%p1124_p4)
}
 0x6d7   :  { %s1128_s20 = scalar_lea.hbm %s1382_s6, 128 }
 0x6d8   :  { %p1129_p5 = scmp.ne.s32.totalorder %s1382_s6, %s1128_s20  ;;  %p1132_p6 = scmp.lt.u32.totalorder %s1128_s20, %s1382_s6 }
 0x6da   :  { %p1134_p7 = pnand %p1132_p6, %p1129_p5 }
 0x6dc   :  { %1137 = shalt.err (!%p1134_p7)
}
 0x6dd   :  { %863 = dma.vmem_to_hbm [thread:$0]  %s861_s16, 128, %s1382_s6, [#allocation3]  }
 0x7a8   :  { %v1061_v21 = vpop.f32.mrb[12].mxu1 }
 0x7a9   :  { %850 = vst.msk [vmem:[%s1381_s5 + $0x38] sm:$0xff] %vm842_vm4, %v1061_v21  ;;  %v833_v31 = vpop.f32.mrb[13].mxu1 }
 0x7aa   :  { %849 = vst.msk [vmem:[%s1381_s5 + $0x30] sm:$0xff] %vm842_vm4, %v833_v31 }
 0x7ab   :  { %1138 = dma.done.wait [#allocation3], 128  }
 0x7ac   :  { %1139 = vsyncadd [#allocation3], 4294967168 }
 0x7ad   :  { %869 = vsyncpa [#allocation3], 1 }

</bundles_post_ra>
